<compile_context>
chip_gen: v7x
topology: tpu7x:2x2x1
jax: 0.10.0
libtpu: 0.0.40
codegen_flags: <defaults>
</compile_context>

<pallas_src>
import functools

import jax
import jax.numpy as jnp
from jax.experimental import pallas as pl
from jax.experimental.pallas import tpu as pltpu

DEPTH = 4
EPS = 1e-5
NEG = -1e30   # "minus infinity" bias for off-branch / pad table rows (ReLU -> 0)


def _grids(depth=DEPTH):
    """Pooling grids, 8-aligned table row offset per grid, total table rows."""
    gs = [2 ** s for s in range(depth)]
    offs, acc = [], 0
    for g in gs:
        offs.append(acc)
        acc += max(8 * ((g * g + 7) // 8), 8)      # sublane-aligned region / level
    return gs, offs, acc


def _vmem_limit_bytes():
    """Per-generation VMEM budget (~96 MiB v5e/v6e, ~48 MiB v7x)."""
    try:
        cap = int(pltpu.get_tpu_info().vmem_capacity_bytes)
    except Exception:
        cap = 64 * 1024 * 1024
    return min(cap * 3 // 4, 100 * 1024 * 1024)


# ---------------------------------------------------------------------------
# Phase A: block-max table + branch 1x1 convs + branch half of the final conv.
# ---------------------------------------------------------------------------
def table_kernel(x_ref, wb_ref, bias_ref, wfp_ref, tab_ref, fin_ref, *, H, W, C):
    """Grid (N, gmax).  x_ref: (H/gmax, W, C) row band.  Output tab_ref: (R, C)
    per-image contribution table (branch outputs already pushed through the
    branch half of the final conv)."""
    gs, offs, R = _grids()
    gmax = gs[-1]
    b = pl.program_id(1)                               # finest-grid row block

    # Row-band reduction: (H/gmax, W, C) -> finest column-block maxes (gmax, C).
    xb = x_ref[...]
    colmax = jnp.max(xb, axis=0)                                    # (W, C)
    fin_ref[b] = jnp.max(colmax.reshape(gmax, W // gmax, C), axis=1)

    @pl.when(b == pl.num_programs(1) - 1)
    def _():
        # Coarser grids by pairwise max of the finest (gmax, gmax, C) table.
        levels = {gmax: fin_ref[...]}                               # (g, g, C)
        g = gmax // 2
        while g >= 1:
            prev = levels[2 * g]                                    # (2g, 2g, C)
            pr = prev.reshape(g, 2, 2 * g, C)
            rm = jnp.maximum(pr[:, 0], pr[:, 1])                    # (g, 2g, C)
            cm = rm.reshape(g, g, 2, C)
            levels[g] = jnp.maximum(cm[:, :, 0], cm[:, :, 1])       # (g, g, C)
            g //= 2

        # Compact table: level s occupies rows offs[s] + i*g + j (row-major),
        # zero-padded to 8-aligned regions (pad rows killed by the NEG bias).
        blocks = []
        for s, gg in enumerate(gs):
            blk = levels[gg].reshape(gg * gg, C)
            end = offs[s + 1] if s + 1 < len(offs) else R
            pad = end - offs[s] - gg * gg
            if pad:
                blk = jnp.concatenate([blk, jnp.zeros((pad, C), blk.dtype)], 0)
            blocks.append(blk)
        pooled = jnp.concatenate(blocks, axis=0)                    # (R, C) f32

        # All four branch 1x1 convs: ONE stacked matmul; off-branch / pad rows
        # carry a -1e30 bias so the ReLU zeroes them (f32: tiny table, exact).
        res = jnp.dot(pooled, wb_ref[...], preferred_element_type=jnp.float32)
        br = jnp.maximum(res + bias_ref[...], 0.0)                  # (R, D*Cq)
        # Branch half of the final 1x1 conv, still on the tiny table.
        tab_ref[...] = jnp.dot(br, wfp_ref[...],
                               preferred_element_type=jnp.float32)  # (R, C)


# ---------------------------------------------------------------------------
# Phase B: spatially tiled per-pixel apply (identity conv + broadcast adds).
# ---------------------------------------------------------------------------
def apply_kernel(x_ref, tab_ref, wfx_ref, bf_ref, o_ref, *, H, W, C, TH):
    """Grid (N, H/TH).  x_ref/o_ref: (TH, W, C) row tile, tab_ref: (R, C)."""
    gs, offs, _ = _grids()
    row0 = pl.program_id(1) * TH                       # first image row of tile

    # Identity half of the final conv: bf16 MXU matmul, f32 accumulation.
    xf = x_ref[...].reshape(TH * W, C).astype(jnp.bfloat16)
    acc = jnp.dot(xf, wfx_ref[...], preferred_element_type=jnp.float32)
    acc = acc.reshape(TH, W, C)

    # Per-scale branch contributions: structured broadcast-adds (no selection
    # matmul).  The tile lies inside exactly one row block of every scale
    # because TH divides H // gmax.
    for s, g in enumerate(gs):
        start = pl.multiple_of(offs[s] + (row0 // (H // g)) * g, g)
        c = tab_ref[pl.ds(start, g), :]                             # (g, C)
        bw = W // g
        acc = (acc.reshape(TH, g, bw, C) + c.reshape(1, g, 1, C)
               ).reshape(TH, W, C)

    o_ref[...] = jnp.maximum(acc + bf_ref[...], 0.0).astype(o_ref.dtype)


# ---------------------------------------------------------------------------
# Wrapper
# ---------------------------------------------------------------------------
def psp_pooling(x, wb, bb, wf, bf, *, tile_rows=None):
    """x: (N, H, W, C) NHWC.  wb: (DEPTH, C, Cq) BN-folded branch 1x1 convs,
    bb: (DEPTH, Cq), wf: (2C, C) BN-folded final 1x1 conv, bf: (1, C)."""
    N, H, W, C = x.shape
    Cq = C // DEPTH
    gs, offs, R = _grids()
    gmax = gs[-1]
    assert C % DEPTH == 0, "nfilters must be divisible by depth"
    assert H % gmax == 0 and W % gmax == 0, "H, W must be divisible by 2^(depth-1)"

    BH = H // gmax                                     # phase-A row band height
    TH = BH if tile_rows is None else tile_rows        # phase-B row tile height
    assert BH % TH == 0, "tile_rows must divide H // 2^(depth-1)"

    # Host-side weight prep: stack branch convs, fold branch masking into a
    # NEG bias table, pre-split the final conv, cast the hot weight to bf16.
    wb_all = jnp.concatenate([wb[s] for s in range(DEPTH)], axis=1)  # (C, D*Cq)
    bias_tab = jnp.full((R, DEPTH * Cq), NEG, jnp.float32)
    for s, g in enumerate(gs):
        bias_tab = bias_tab.at[offs[s]:offs[s] + g * g,
                               s * Cq:(s + 1) * Cq].set(bb[s])
    wfx_bf = wf[:C, :].astype(jnp.bfloat16)            # identity half (hot matmul)
    wfp_f32 = wf[C:, :]                                # branch half (tiny table)
    bf = bf.reshape(1, C).astype(jnp.float32)

    vlim = _vmem_limit_bytes()

    # Phase A: per-image (R, C) contribution table.
    table = pl.pallas_call(
        functools.partial(table_kernel, H=H, W=W, C=C),
        out_shape=jax.ShapeDtypeStruct((N, R, C), jnp.float32),
        grid_spec=pltpu.PrefetchScalarGridSpec(
            num_scalar_prefetch=0,
            grid=(N, gmax),
            in_specs=[
                pl.BlockSpec((None, BH, W, C), lambda n, b: (n, b, 0, 0)),
                pl.BlockSpec((C, DEPTH * Cq), lambda n, b: (0, 0)),
                pl.BlockSpec((R, DEPTH * Cq), lambda n, b: (0, 0)),
                pl.BlockSpec((DEPTH * Cq, C), lambda n, b: (0, 0)),
            ],
            out_specs=pl.BlockSpec((None, R, C), lambda n, b: (n, 0, 0)),
            scratch_shapes=[pltpu.VMEM((gmax, gmax, C), jnp.float32)],
        ),
        compiler_params=pltpu.CompilerParams(
            dimension_semantics=("parallel", "arbitrary"),
            vmem_limit_bytes=vlim),
    )(x, wb_all, bias_tab, wfp_f32)

    # Phase B: spatially tiled apply.
    out = pl.pallas_call(
        functools.partial(apply_kernel, H=H, W=W, C=C, TH=TH),
        out_shape=jax.ShapeDtypeStruct((N, H, W, C), x.dtype),
        grid_spec=pltpu.PrefetchScalarGridSpec(
            num_scalar_prefetch=0,
            grid=(N, H // TH),
            in_specs=[
                pl.BlockSpec((None, TH, W, C), lambda n, t: (n, t, 0, 0)),
                pl.BlockSpec((None, R, C), lambda n, t: (n, 0, 0)),
                pl.BlockSpec((C, C), lambda n, t: (0, 0)),
                pl.BlockSpec((1, C), lambda n, t: (0, 0)),
            ],
            out_specs=pl.BlockSpec((None, TH, W, C), lambda n, t: (n, t, 0, 0)),
        ),
        compiler_params=pltpu.CompilerParams(
            dimension_semantics=("parallel", "parallel"),
            vmem_limit_bytes=vlim),
    )(x, table, wfx_bf, bf)
    return out


# ---------------------------------------------------------------------------
# Parameters / reference
# ---------------------------------------------------------------------------
def fold_bn(w, b, gamma, beta, mean, var, eps=EPS):
    """Fold inference-mode BatchNorm into a 1x1 conv (w: (Cin, Cout), b: (Cout,))."""
    scale = gamma / jnp.sqrt(var + eps)
    return w * scale[None, :], (b - mean) * scale + beta


def make_params(key, C):
    """Deterministic synthetic parameters (matches PyTorch module shapes)."""
    Cq = C // DEPTH
    ks = jax.random.split(key, 6 * DEPTH + 6)
    wb, bb = [], []
    for s in range(DEPTH):
        k = ks[6 * s:6 * s + 6]
        w = jax.random.normal(k[0], (C, Cq), jnp.float32) * 0.3   # Conv2d(C, Cq, 1)
        b = jax.random.normal(k[1], (Cq,), jnp.float32) * 0.1
        gamma = 1.0 + 0.1 * jax.random.normal(k[2], (Cq,), jnp.float32)
        beta = 0.1 * jax.random.normal(k[3], (Cq,), jnp.float32)
        mean = 0.1 * jax.random.normal(k[4], (Cq,), jnp.float32)
        var = jnp.abs(jax.random.normal(k[5], (Cq,), jnp.float32)) + 0.5
        w_f, b_f = fold_bn(w, b, gamma, beta, mean, var)
        wb.append(w_f)
        bb.append(b_f)
    kf = ks[6 * DEPTH:]
    wf = jax.random.normal(kf[0], (2 * C, C), jnp.float32) * 0.2  # Conv2d(2C, C, 1)
    bf = jax.random.normal(kf[1], (C,), jnp.float32) * 0.1
    gamma = 1.0 + 0.1 * jax.random.normal(kf[2], (C,), jnp.float32)
    beta = 0.1 * jax.random.normal(kf[3], (C,), jnp.float32)
    mean = 0.1 * jax.random.normal(kf[4], (C,), jnp.float32)
    var = jnp.abs(jax.random.normal(kf[5], (C,), jnp.float32)) + 0.5
    wf_f, bf_f = fold_bn(wf, bf, gamma, beta, mean, var)
    return (jnp.stack(wb), jnp.stack(bb), wf_f, bf_f.reshape(1, C))


def ref_psp(x, wb, bb, wf, bf):
    """Pure-JAX reference (NHWC) of PSP_Pooling.forward (inference BN folded)."""
    N, H, W, C = x.shape
    branches = []
    for s in range(DEPTH):
        g = 2 ** s
        r = x.reshape(N, g, H // g, g, W // g, C)
        m = r.max(axis=(2, 4), keepdims=True)
        pooled = jnp.broadcast_to(m, r.shape).reshape(N, H, W, C)
        y = jnp.einsum("nhwc,cd->nhwd", pooled, wb[s]) + bb[s]
        branches.append(jnp.maximum(y, 0.0))
    cat = jnp.concatenate([x] + branches, axis=-1)
    out = jnp.einsum("nhwc,cd->nhwd", cat, wf) + bf.reshape(1, 1, 1, C)
    return jnp.maximum(out, 0.0)


if __name__ == "__main__":
    # nfilters=8 (divisible by depth=4), H=W=16 (divisible by 2^(depth-1)=8), N=2.
    N, H, W, C = 2, 16, 16, 8
    key = jax.random.PRNGKey(0)
    kx, kp = jax.random.split(key)
    x = jax.random.normal(kx, (N, H, W, C), jnp.float32)
    wb, bb, wf, bf = make_params(kp, C)

    out = jax.block_until_ready(psp_pooling(x, wb, bb, wf, bf))
    ref = jax.block_until_ready(ref_psp(x, wb, bb, wf, bf))

    assert out.shape == (N, H, W, C)
    err = float(jnp.max(jnp.abs(out - ref)))
    # Tolerance loosened vs pure-f32: the per-pixel final-conv matmul runs with
    # bf16 operands (f32 accumulation); all table-side math stays f32.
    assert jnp.allclose(out, ref, rtol=2e-2, atol=5e-2), err
    print("KERNEL_OK")
</pallas_src>

<mosaic_0001>
module attributes {stable_mosaic.version = 11 : i64} {
  func.func @table_kernel(%arg0: i32, %arg1: i32, %arg2: memref<1x2x16x8xf32, #tpu.memory_space<vmem>>, %arg3: memref<8x8xf32, #tpu.memory_space<vmem>>, %arg4: memref<96x8xf32, #tpu.memory_space<vmem>>, %arg5: memref<8x8xf32, #tpu.memory_space<vmem>>, %arg6: memref<1x96x8xf32, #tpu.memory_space<vmem>>, %arg7: memref<8x8x8xf32, #tpu.memory_space<vmem>>) attributes {dimension_semantics = [#tpu.dimension_semantics<parallel>, #tpu.dimension_semantics<arbitrary>], iteration_bounds = array<i64: 2, 8>, scalar_prefetch = 0 : i64, scratch_operands = 1 : i64, tpu.core_type = #tpu.core_type<tc>, window_params = [{transform_indices = @transform_0, window_bounds = array<i64: 1, 2, 16, 8>}, {pipeline_mode = #tpu.pipeline_mode<synchronous>, transform_indices = @transform_1, window_bounds = array<i64: 8, 8>}, {pipeline_mode = #tpu.pipeline_mode<synchronous>, transform_indices = @transform_2, window_bounds = array<i64: 96, 8>}, {pipeline_mode = #tpu.pipeline_mode<synchronous>, transform_indices = @transform_3, window_bounds = array<i64: 8, 8>}, {transform_indices = @transform_4, window_bounds = array<i64: 1, 96, 8>}]} {
    %c0 = arith.constant 0 : index
    %c0_0 = arith.constant 0 : index
    %c0_1 = arith.constant 0 : index
    %c0_2 = arith.constant 0 : index
    %0 = vector.load %arg2[%c0, %c0_0, %c0_1, %c0_2] : memref<1x2x16x8xf32, #tpu.memory_space<vmem>>, vector<1x2x16x8xf32>
    %1 = vector.shape_cast %0 : vector<1x2x16x8xf32> to vector<2x16x8xf32>
    %cst = arith.constant dense<0xFF800000> : vector<16x8xf32>
    %2 = vector.multi_reduction <maximumf>, %1, %cst [0] : vector<2x16x8xf32> to vector<16x8xf32>
    %3 = vector.shape_cast %2 : vector<16x8xf32> to vector<8x2x8xf32>
    %cst_3 = arith.constant dense<0xFF800000> : vector<8x8xf32>
    %4 = vector.multi_reduction <maximumf>, %3, %cst_3 [1] : vector<8x2x8xf32> to vector<8x8xf32>
    %5 = arith.index_cast %arg1 : i32 to index
    %c0_4 = arith.constant 0 : index
    %c0_5 = arith.constant 0 : index
    %6 = vector.load %arg7[%5, %c0_4, %c0_5] : memref<8x8x8xf32, #tpu.memory_space<vmem>>, vector<1x8x8xf32>
    %7 = vector.shape_cast %6 : vector<1x8x8xf32> to vector<8x8xf32>
    %8 = vector.shape_cast %4 : vector<8x8xf32> to vector<1x8x8xf32>
    tpu.vector_store %arg7[%5, %c0_4, %c0_5], %8 {strides = array<i32>} : memref<8x8x8xf32, #tpu.memory_space<vmem>>, vector<1x8x8xf32>,
    %c7_i32 = arith.constant 7 : i32
    %9 = arith.cmpi eq, %arg1, %c7_i32 : i32
    %10 = arith.extui %9 : i1 to i32
    %c0_i32 = arith.constant 0 : i32
    %11 = arith.cmpi ne, %10, %c0_i32 : i32
    scf.if %11 {
      %c0_6 = arith.constant 0 : index
      %c0_7 = arith.constant 0 : index
      %c0_8 = arith.constant 0 : index
      %12 = vector.load %arg7[%c0_6, %c0_7, %c0_8] : memref<8x8x8xf32, #tpu.memory_space<vmem>>, vector<8x8x8xf32>
      %13 = vector.shape_cast %12 : vector<8x8x8xf32> to vector<4x2x8x8xf32>
      %14 = vector.extract_strided_slice %13 {offsets = [0, 0, 0, 0], sizes = [4, 1, 8, 8], strides = [1, 1, 1, 1]} : vector<4x2x8x8xf32> to vector<4x1x8x8xf32>
      %15 = vector.shape_cast %14 : vector<4x1x8x8xf32> to vector<4x8x8xf32>
      %16 = vector.extract_strided_slice %13 {offsets = [0, 1, 0, 0], sizes = [4, 1, 8, 8], strides = [1, 1, 1, 1]} : vector<4x2x8x8xf32> to vector<4x1x8x8xf32>
      %17 = vector.shape_cast %16 : vector<4x1x8x8xf32> to vector<4x8x8xf32>
      %18 = arith.maximumf %15, %17 : vector<4x8x8xf32>
      %19 = vector.shape_cast %18 : vector<4x8x8xf32> to vector<4x4x2x8xf32>
      %20 = vector.extract_strided_slice %19 {offsets = [0, 0, 0, 0], sizes = [4, 4, 1, 8], strides = [1, 1, 1, 1]} : vector<4x4x2x8xf32> to vector<4x4x1x8xf32>
      %21 = vector.shape_cast %20 : vector<4x4x1x8xf32> to vector<4x4x8xf32>
      %22 = vector.extract_strided_slice %19 {offsets = [0, 0, 1, 0], sizes = [4, 4, 1, 8], strides = [1, 1, 1, 1]} : vector<4x4x2x8xf32> to vector<4x4x1x8xf32>
      %23 = vector.shape_cast %22 : vector<4x4x1x8xf32> to vector<4x4x8xf32>
      %24 = arith.maximumf %21, %23 : vector<4x4x8xf32>
      %25 = vector.shape_cast %24 : vector<4x4x8xf32> to vector<2x2x4x8xf32>
      %26 = vector.extract_strided_slice %25 {offsets = [0, 0, 0, 0], sizes = [2, 1, 4, 8], strides = [1, 1, 1, 1]} : vector<2x2x4x8xf32> to vector<2x1x4x8xf32>
      %27 = vector.shape_cast %26 : vector<2x1x4x8xf32> to vector<2x4x8xf32>
      %28 = vector.extract_strided_slice %25 {offsets = [0, 1, 0, 0], sizes = [2, 1, 4, 8], strides = [1, 1, 1, 1]} : vector<2x2x4x8xf32> to vector<2x1x4x8xf32>
      %29 = vector.shape_cast %28 : vector<2x1x4x8xf32> to vector<2x4x8xf32>
      %30 = arith.maximumf %27, %29 : vector<2x4x8xf32>
      %31 = vector.shape_cast %30 : vector<2x4x8xf32> to vector<2x2x2x8xf32>
      %32 = vector.extract_strided_slice %31 {offsets = [0, 0, 0, 0], sizes = [2, 2, 1, 8], strides = [1, 1, 1, 1]} : vector<2x2x2x8xf32> to vector<2x2x1x8xf32>
      %33 = vector.shape_cast %32 : vector<2x2x1x8xf32> to vector<2x2x8xf32>
      %34 = vector.extract_strided_slice %31 {offsets = [0, 0, 1, 0], sizes = [2, 2, 1, 8], strides = [1, 1, 1, 1]} : vector<2x2x2x8xf32> to vector<2x2x1x8xf32>
      %35 = vector.shape_cast %34 : vector<2x2x1x8xf32> to vector<2x2x8xf32>
      %36 = arith.maximumf %33, %35 : vector<2x2x8xf32>
      %37 = vector.shape_cast %36 : vector<2x2x8xf32> to vector<1x2x2x8xf32>
      %38 = vector.extract_strided_slice %37 {offsets = [0, 0, 0, 0], sizes = [1, 1, 2, 8], strides = [1, 1, 1, 1]} : vector<1x2x2x8xf32> to vector<1x1x2x8xf32>
      %39 = vector.shape_cast %38 : vector<1x1x2x8xf32> to vector<1x2x8xf32>
      %40 = vector.extract_strided_slice %37 {offsets = [0, 1, 0, 0], sizes = [1, 1, 2, 8], strides = [1, 1, 1, 1]} : vector<1x2x2x8xf32> to vector<1x1x2x8xf32>
      %41 = vector.shape_cast %40 : vector<1x1x2x8xf32> to vector<1x2x8xf32>
      %42 = arith.maximumf %39, %41 : vector<1x2x8xf32>
      %43 = vector.shape_cast %42 : vector<1x2x8xf32> to vector<1x1x2x8xf32>
      %44 = vector.extract_strided_slice %43 {offsets = [0, 0, 0, 0], sizes = [1, 1, 1, 8], strides = [1, 1, 1, 1]} : vector<1x1x2x8xf32> to vector<1x1x1x8xf32>
      %45 = vector.shape_cast %44 : vector<1x1x1x8xf32> to vector<1x1x8xf32>
      %46 = vector.extract_strided_slice %43 {offsets = [0, 0, 1, 0], sizes = [1, 1, 1, 8], strides = [1, 1, 1, 1]} : vector<1x1x2x8xf32> to vector<1x1x1x8xf32>
      %47 = vector.shape_cast %46 : vector<1x1x1x8xf32> to vector<1x1x8xf32>
      %48 = arith.maximumf %45, %47 : vector<1x1x8xf32>
      %49 = vector.shape_cast %48 : vector<1x1x8xf32> to vector<1x8xf32>
      %cst_9 = arith.constant 0.000000e+00 : f32
      %50 = vector.broadcast %cst_9 : f32 to vector<7x8xf32>
      %51 = tpu.concatenate %49, %50 in 0 : vector<1x8xf32>, vector<7x8xf32> -> vector<8x8xf32>
      %52 = vector.shape_cast %36 : vector<2x2x8xf32> to vector<4x8xf32>
      %cst_10 = arith.constant 0.000000e+00 : f32
      %53 = vector.broadcast %cst_10 : f32 to vector<4x8xf32>
      %54 = tpu.concatenate %52, %53 in 0 : vector<4x8xf32>, vector<4x8xf32> -> vector<8x8xf32>
      %55 = vector.shape_cast %24 : vector<4x4x8xf32> to vector<16x8xf32>
      %56 = vector.shape_cast %12 : vector<8x8x8xf32> to vector<64x8xf32>
      %57 = tpu.concatenate %51, %54, %55, %56 in 0 : vector<8x8xf32>, vector<8x8xf32>, vector<16x8xf32>, vector<64x8xf32> -> vector<96x8xf32>
      %c0_11 = arith.constant 0 : index
      %c0_12 = arith.constant 0 : index
      %58 = vector.load %arg3[%c0_11, %c0_12] : memref<8x8xf32, #tpu.memory_space<vmem>>, vector<8x8xf32>
      %cst_13 = arith.constant dense<0.000000e+00> : vector<96x8xf32>
      %59 = tpu.matmul %57, %58, %cst_13 {dimension_numbers = #tpu.dot_dimension_numbers<[1], [0], [0], [1], [0, 0, 1, 1], [], []>} : vector<96x8xf32>, vector<8x8xf32>, vector<96x8xf32> -> vector<96x8xf32>
      %c0_14 = arith.constant 0 : index
      %c0_15 = arith.constant 0 : index
      %60 = vector.load %arg4[%c0_14, %c0_15] : memref<96x8xf32, #tpu.memory_space<vmem>>, vector<96x8xf32>
      %61 = arith.addf %59, %60 : vector<96x8xf32>
      %cst_16 = arith.constant 0.000000e+00 : f32
      %62 = vector.broadcast %cst_16 : f32 to vector<96x8xf32>
      %63 = arith.maximumf %61, %62 : vector<96x8xf32>
      %c0_17 = arith.constant 0 : index
      %c0_18 = arith.constant 0 : index
      %64 = vector.load %arg5[%c0_17, %c0_18] : memref<8x8xf32, #tpu.memory_space<vmem>>, vector<8x8xf32>
      %cst_19 = arith.constant dense<0.000000e+00> : vector<96x8xf32>
      %65 = tpu.matmul %63, %64, %cst_19 {dimension_numbers = #tpu.dot_dimension_numbers<[1], [0], [0], [1], [0, 0, 1, 1], [], []>} : vector<96x8xf32>, vector<8x8xf32>, vector<96x8xf32> -> vector<96x8xf32>
      %c0_20 = arith.constant 0 : index
      %c0_21 = arith.constant 0 : index
      %c0_22 = arith.constant 0 : index
      %66 = vector.load %arg6[%c0_20, %c0_21, %c0_22] : memref<1x96x8xf32, #tpu.memory_space<vmem>>, vector<1x96x8xf32>
      %67 = vector.shape_cast %66 : vector<1x96x8xf32> to vector<96x8xf32>
      %68 = vector.shape_cast %65 : vector<96x8xf32> to vector<1x96x8xf32>
      tpu.vector_store %arg6[%c0_20, %c0_21, %c0_22], %68 {strides = array<i32>} : memref<1x96x8xf32, #tpu.memory_space<vmem>>, vector<1x96x8xf32>,
    } else {
    }
    return
  }
  func.func @transform_0(%arg0: i32, %arg1: i32) -> (i32, i32, i32, i32) {
    %c0_i32 = arith.constant 0 : i32
    %c0_i32_0 = arith.constant 0 : i32
    %c0_i32_1 = arith.constant 0 : i32
    return %arg0, %arg1, %c0_i32, %c0_i32_0 : i32, i32, i32, i32
  }
  func.func @transform_1(%arg0: i32, %arg1: i32) -> (i32, i32) {
    %c0_i32 = arith.constant 0 : i32
    %c0_i32_0 = arith.constant 0 : i32
    %c0_i32_1 = arith.constant 0 : i32
    return %c0_i32, %c0_i32_0 : i32, i32
  }
  func.func @transform_2(%arg0: i32, %arg1: i32) -> (i32, i32) {
    %c0_i32 = arith.constant 0 : i32
    %c0_i32_0 = arith.constant 0 : i32
    %c0_i32_1 = arith.constant 0 : i32
    return %c0_i32, %c0_i32_0 : i32, i32
  }
  func.func @transform_3(%arg0: i32, %arg1: i32) -> (i32, i32) {
    %c0_i32 = arith.constant 0 : i32
    %c0_i32_0 = arith.constant 0 : i32
    %c0_i32_1 = arith.constant 0 : i32
    return %c0_i32, %c0_i32_0 : i32, i32
  }
  func.func @transform_4(%arg0: i32, %arg1: i32) -> (i32, i32, i32) {
    %c0_i32 = arith.constant 0 : i32
    %c0_i32_0 = arith.constant 0 : i32
    %c0_i32_1 = arith.constant 0 : i32
    return %arg0, %c0_i32, %c0_i32_0 : i32, i32, i32
  }
}

</mosaic_0001>

<bundles_post_ra>
// kernel: tpu_custom_call.1
= control target key start
LH: loop header
LB: loop body
LE: loop exit
PB: predicated region body
PF: predicated region fallthrough
CT: control target
= control target key end

     0   :  { %s1335_s15 = smov 0   ;;  %s1337_s16 = smov 0   ;;  %s1594_s0 = inlined_call_operand.vmem [shape: f32[2,16,16,8], index: 0, kind: input, shape index: {}]   ;;  %s1595_s1 = inlined_call_operand.vmem [shape: f32[8,8], index: 1, kind: input, shape index: {}]   ;;  %s1596_s2 = inlined_call_operand.vmem [shape: f32[96,8], index: 2, kind: input, shape index: {}]   ;;  %s1597_s3 = inlined_call_operand.vmem [shape: f32[8,8], index: 3, kind: input, shape index: {}]   ;;  %s1598_s4 = inlined_call_operand.vmem [shape: f32[2,96,8], index: 4, kind: output, shape index: {}]  }
   0x1   :  { %s1339_s17 = smov 0   ;;  %s1341_s18 = smov 0  }
   0x2   :  { %s1343_s19 = smov 0  }
   0x3 LB: > { %s23_s20 = sadd.s32 1, %s1299_s17  ;;  %s26_s21 = sadd.s32 1, %s1303_s18  ;;  %s1307_s19 = sphi %s1343_s19, %s14_s19   ;;  %s1303_s18 = sphi %s1341_s18, %s1602_s18   ;;  %s1299_s17 = sphi %s1339_s17, %s1601_s17   ;;  %s1295_s16 = sphi %s1337_s16, %s1600_s16   ;;  %s1291_s15 = sphi %s1335_s15, %s1599_s15  }
   0x4   : > { %p24_p0 = scmp.ge.s32.totalorder %s23_s20, 8  ;;  %p1111_p1 = scmp.ge.s32.totalorder %s1307_s19, 1 }
   0x5   : > { %p182_p2 = scmp.lt.s32.totalorder %s1307_s19, 17 }
   0x6   : > { %s1604_s20 = smov (%p24_p0, %s23_s20), 0  ;;  %s1606_s21 = smov (!%p24_p0, %s26_s21), %s1303_s18 }
   0x7   : > { %p183_p3 = pnand %p1111_p1, %p182_p2  ;;  %p28_p4 = scmp.ge.s32.totalorder %s1606_s21, 2 }
   0x8   : > { %s1112_s22 = sshll.u32 (!%p183_p3), %s1291_s15, 1  ;;  %p214_p5 = scmp.lt.s32.totalorder (!%p183_p3), %s1295_s16, 1  ;;  %v1309_v0 = vmov (!%p183_p3), 1983009808   ;;  %v246_v2 = vlaneseq (!%p183_p3)  ;;  %vm233_vm0 = vcmask (!%p183_p3), 64512   ;;  %vm284_vm1 = vcmask (!%p183_p3), 58368  }
   0x9   : > { %s1608_s21 = smov (%p28_p4, %s1606_s21), 0  ;;  %186 = sbr.rel (%p183_p3) target bundleno = 539 (0x21b), region = 36 }
   0xa   : > { %p216_p6 = scmp.lt.s32.totalorder (!%p183_p3), %s1112_s22, 15  ;;  %v244_v1 = vunpack.c.l.s4 (!%p183_p3), %v1309_v0  ;;  %v1368_v4 = vshrl.u32 (!%p183_p3), %v246_v2, 7  ;;  %vm349_vm2 = vcmask (!%p183_p3), 1041409   ;;  %vm351_vm3 = vcmask (!%p183_p3), 1042434   ;;  %s1117_s8 = sshll.u32 (!%p183_p3), %s1291_s15, 3 }
   0xb   : > { %vm353_vm4 = vcmask (!%p183_p3), 1043459   ;;  %vm355_vm5 = vcmask (!%p183_p3), 1044484   ;;  %vm357_vm6 = vcmask (!%p183_p3), 1045509   ;;  %vm359_vm7 = vcmask (!%p183_p3), 1046534   ;;  %s365_s9 = scalar_lea.vmem (!%p183_p3), [#allocation2], %s1117_s8  ;;  %p1118_p7 = scmp.ne.s32.totalorder (!%p183_p3), %s1291_s15, 7 }
   0xc   : > { %v245_v3 = vunpack.c.0.s8 (!%p183_p3), %v244_v1  ;;  %vm361_vm8 = vcmask (!%p183_p3), 1047559  }
   0xe   : > { %v1379_v8 = vsub.s32 (!%p183_p3), %v245_v3, %v1368_v4 }
  0x10   : > { %s1610_s16 = smov (!%p214_p5, %s1295_s16), 1  ;;  %s1612_s22 = smov (!%p216_p6, %s1112_s22), 15 }
  0x11   : > { %s1114_s23 = sshll.u32 %s1610_s16, 5  ;;  %s1227_s24 = smul.u32 96, %s1610_s16  ;;  %vm550_vm9 = vcmask (!%p1118_p7), 1040384   ;;  %vm576_vm10 = vcmask (!%p1118_p7), 1043456  }
  0x12   : > { %s1113_s25 = sshll.u32 %s1612_s22, 1 }
  0x13   : > { %s220_s26 = sadd.s32 %s1114_s23, %s1113_s25  ;;  %s1373_s29 = scalar_lea.vmem %s1598_s4, %s1227_s24 }
  0x14   : > { %s1115_s30 = sshll.u32 %s220_s26, 3 }
  0x15   : > { %s222_s7 = scalar_lea.vmem %s1594_s0, %s1115_s30 }
  0x16   : > { %v229_v5 = vld [vmem:[%s222_s7] sm:$0xff]  ;;  %v230_v6 = vld [vmem:[%s222_s7 + $0x8] sm:$0xff]  ;;  %v231_v7 = vld [vmem:[%s222_s7 + $0x10] sm:$0xff] }
  0x17   : > { %v232_v9 = vld [vmem:[%s222_s7 + $0x18] sm:$0xff]  ;;  %v234_v10 = vsel %vm233_vm0, %v229_v5, -inf  ;;  %v235_v11 = vsel %vm233_vm0, %v231_v7, -inf  ;;  %v237_v12 = vsel %vm233_vm0, %v230_v6, -inf }
  0x18   : > { %v236_v13 = vmax.f32 %v234_v10, %v235_v11  ;;  %v238_v14 = vsel %vm233_vm0, %v232_v9, -inf }
  0x19   : > { %v239_v15 = vmax.f32 %v237_v12, %v238_v14 }
  0x1a   : > { %v242_v16 = vcombine.high %v236_v13, %v236_v13  ;;  %v249_v17 = vrot.slane %v236_v13, %v1379_v8 }
  0x1b   : > { %v259_v18 = vcombine.high %v239_v15, %v239_v15  ;;  %v266_v19 = vrot.slane %v239_v15, %v1379_v8 }
  0x1c   : > { %v256_v20 = vrot.slane %v242_v16, %v1379_v8  ;;  %v257_v21 = vcombine.high %v249_v17, %v249_v17  ;;  %v285_v22 = vsel %vm284_vm1, %v249_v17, -inf }
  0x1d   : > { %v273_v23 = vrot.slane %v259_v18, %v1379_v8  ;;  %v274_v24 = vcombine.high %v266_v19, %v266_v19  ;;  %v286_v25 = vrot.slane %v285_v22, 4  ;;  %v313_v26 = vsel %vm284_vm1, %v266_v19, -inf }
  0x1e   : > { %v258_v27 = vcombine.high %v256_v20, %v256_v20  ;;  %v292_v28 = vsel %vm284_vm1, %v257_v21, -inf  ;;  %v299_v29 = vsel %vm284_vm1, %v256_v20, -inf  ;;  %v314_v30 = vrot.slane %v313_v26, 4 }
  0x1f   : > { %v275_v31 = vcombine.high %v273_v23, %v273_v23  ;;  %v287_v32 = vmax.f32 %v285_v22, %v286_v25  ;;  %v293_v33 = vrot.slane %v292_v28, 4  ;;  %v300_v34 = vrot.slane %v299_v29, 4 }
  0x20   : > { %v306_v35 = vsel %vm284_vm1, %v258_v27, -inf  ;;  %v315_v36 = vmax.f32 %v313_v26, %v314_v30  ;;  %v320_v37 = vsel %vm284_vm1, %v274_v24, -inf  ;;  %v327_v38 = vsel %vm284_vm1, %v273_v23, -inf  ;;  %v672_v27 = vld [vmem:[%s1595_s1] sm:$0xff] (!%p1118_p7) }
  0x21   : > { %v288_v39 = vrot.slane %v287_v32, 2  ;;  %v294_v40 = vmax.f32 %v292_v28, %v293_v33  ;;  %v301_v41 = vmax.f32 %v299_v29, %v300_v34  ;;  %v307_v42 = vrot.slane %v306_v35, 4  ;;  %1187 = vmatprep.subr.mxu0 (!%p1118_p7), %v672_v27 }
  0x22   : > { %v316_v43 = vrot.slane %v315_v36, 2  ;;  %v321_v44 = vrot.slane %v320_v37, 4  ;;  %v328_v45 = vrot.slane %v327_v38, 4  ;;  %v334_v46 = vsel %vm284_vm1, %v275_v31, -inf  ;;  %1188 = vmatpush3.msra.mxu0 (!%p1118_p7), %v672_v27 }
  0x23   : > { %v289_v47 = vmax.f32 %v287_v32, %v288_v39  ;;  %v295_v48 = vrot.slane %v294_v40, 2  ;;  %v302_v49 = vrot.slane %v301_v41, 2  ;;  %v308_v50 = vmax.f32 %v306_v35, %v307_v42 }
  0x24   : > { %v317_v51 = vmax.f32 %v315_v36, %v316_v43  ;;  %v322_v52 = vmax.f32 %v320_v37, %v321_v44  ;;  %v329_v53 = vmax.f32 %v327_v38, %v328_v45  ;;  %v335_v54 = vrot.slane %v334_v46, 4 }
  0x25   : > { %v290_v55 = vrot.slane %v289_v47, 1  ;;  %v296_v56 = vmax.f32 %v294_v40, %v295_v48  ;;  %v303_v57 = vmax.f32 %v301_v41, %v302_v49  ;;  %v309_v58 = vrot.slane %v308_v50, 2 }
  0x26   : > { %v318_v59 = vrot.slane %v317_v51, 1  ;;  %v323_v60 = vrot.slane %v322_v52, 2  ;;  %v330_v61 = vrot.slane %v329_v53, 2  ;;  %v336_v62 = vmax.f32 %v334_v46, %v335_v54 }
  0x27   : > { %v291_v63 = vmax.f32 %v289_v47, %v290_v55  ;;  %v297_v0 = vrot.slane %v296_v56, 1  ;;  %v304_v1 = vrot.slane %v303_v57, 1  ;;  %v310_v2 = vmax.f32 %v308_v50, %v309_v58 }
  0x28   : > { %v324_v3 = vmax.f32 %v322_v52, %v323_v60  ;;  %v331_v5 = vmax.f32 %v329_v53, %v330_v61  ;;  %v337_v6 = vrot.slane %v336_v62, 2  ;;  %v319_v11 = vmax.f32 %v317_v51, %v318_v59 }
  0x29   : > { %v298_v7 = vmax.f32 %v296_v56, %v297_v0  ;;  %v305_v9 = vmax.f32 %v303_v57, %v304_v1  ;;  %v311_v10 = vrot.slane %v310_v2, 1  ;;  %v1437_v44 = vsub.s32 (!%p1118_p7), 0, %v1368_v4 }
  0x2a   : > { %v325_v12 = vrot.slane %v324_v3, 1  ;;  %v332_v13 = vrot.slane %v331_v5, 1  ;;  %v338_v14 = vmax.f32 %v336_v62, %v337_v6 }
  0x2b   : > { %v312_v15 = vmax.f32 %v310_v2, %v311_v10  ;;  %v350_v16 = vsel %vm349_vm2, %v298_v7, %v291_v63 }
  0x2c   : > { %v326_v17 = vmax.f32 %v324_v3, %v325_v12  ;;  %v333_v18 = vmax.f32 %v331_v5, %v332_v13  ;;  %v339_v19 = vrot.slane %v338_v14, 1  ;;  %v352_v20 = vsel %vm351_vm3, %v305_v9, %v350_v16  ;;  %370 = sbr.rel (%p1118_p7) target bundleno = 539 (0x21b), region = 40 }
  0x2d   : > { %v354_v21 = vsel %vm353_vm4, %v312_v15, %v352_v20 }
  0x2e   : > { %v340_v22 = vmax.f32 %v338_v14, %v339_v19  ;;  %v356_v23 = vsel %vm355_vm5, %v319_v11, %v354_v21 }
  0x2f   : > { %v358_v24 = vsel %vm357_vm6, %v326_v17, %v356_v23 }
  0x30   : > { %v360_v25 = vsel %vm359_vm7, %v333_v18, %v358_v24 }
  0x31   : > { %v362_v26 = vsel %vm361_vm8, %v340_v22, %v360_v25 }
  0x32   : > { %366 = vst.msk [vmem:[%s365_s9] sm:$0xff] %vm233_vm0, %v362_v26 }
  0x39   : > { %v1410_v28 = vld [vmem:[#allocation2] sm:$0xff]  ;;  %v1412_v29 = vld [vmem:[#allocation2 + $0x8] sm:$0xff]  ;;  %v1414_v30 = vld [vmem:[#allocation2 + $0x10] sm:$0xff] }
  0x3a   : > { %v1416_v31 = vld [vmem:[#allocation2 + $0x18] sm:$0xff]  ;;  %v1418_v32 = vld [vmem:[#allocation2 + $0x20] sm:$0xff]  ;;  %v379_v33 = vmax.f32 %v1410_v28, %v1412_v29  ;;  %v1422_v34 = vld [vmem:[#allocation2 + $0x28] sm:$0xff] }
  0x3b   : > { %v1424_v35 = vld [vmem:[#allocation2 + $0x30] sm:$0xff]  ;;  %v1426_v36 = vld [vmem:[#allocation2 + $0x38] sm:$0xff]  ;;  %v380_v37 = vmax.f32 %v1414_v30, %v1416_v31  ;;  %v381_v38 = vmax.f32 %v1418_v32, %v1422_v34 }
  0x3c   : > { %v382_v39 = vmax.f32 %v1424_v35, %v1426_v36  ;;  %v387_v40 = vcombine.high %v379_v33, %v379_v33  ;;  %v394_v41 = vrot.slane %v379_v33, %v1379_v8 }
  0x3d   : > { %v404_v42 = vcombine.high %v380_v37, %v380_v37  ;;  %v411_v43 = vrot.slane %v380_v37, %v1379_v8  ;;  %v421_v47 = vcombine.high %v381_v38, %v381_v38  ;;  %v428_v48 = vrot.slane %v381_v38, %v1379_v8 }
  0x3e   : > { %v401_v45 = vrot.slane %v387_v40, %v1379_v8  ;;  %v402_v46 = vcombine.high %v394_v41, %v394_v41  ;;  %v438_v51 = vcombine.high %v382_v39, %v382_v39  ;;  %v445_v52 = vrot.slane %v382_v39, %v1379_v8 }
  0x3f   : > { %v418_v49 = vrot.slane %v404_v42, %v1379_v8  ;;  %v419_v50 = vcombine.high %v411_v43, %v411_v43  ;;  %v435_v54 = vrot.slane %v421_v47, %v1379_v8  ;;  %v436_v55 = vcombine.high %v428_v48, %v428_v48 }
  0x40   : > { %v403_v53 = vcombine.high %v401_v45, %v401_v45  ;;  %v1119_v56 = vrot.slane %v394_v41, 9  ;;  %v452_v4 = vrot.slane %v438_v51, %v1379_v8  ;;  %v453_v58 = vcombine.high %v445_v52, %v445_v52 }
  0x41   : > { %v420_v57 = vcombine.high %v418_v49, %v418_v49  ;;  %v1120_v59 = vrot.slane %v402_v46, 9  ;;  %v437_v60 = vcombine.high %v435_v54, %v435_v54  ;;  %v1121_v61 = vrot.slane %v401_v45, 9 }
  0x42   : > { %v1122_v62 = vrot.slane %v403_v53, 9  ;;  %v1123_v63 = vrot.slane %v411_v43, 9  ;;  %v454_v0 = vcombine.high %v452_v4, %v452_v4  ;;  %v1124_v1 = vrot.slane %v419_v50, 9 }
  0x43   : > { %v1125_v2 = vrot.slane %v418_v49, 9  ;;  %v1126_v3 = vrot.slane %v420_v57, 9  ;;  %v1127_v5 = vrot.slane %v428_v48, 9  ;;  %v1128_v6 = vrot.slane %v436_v55, 9 }
  0x44   : > { %v1129_v7 = vrot.slane %v435_v54, 9  ;;  %v1130_v9 = vrot.slane %v437_v60, 9  ;;  %v1131_v10 = vrot.slane %v445_v52, 9  ;;  %v1132_v11 = vrot.slane %v453_v58, 9 }
  0x45   : > { %v1133_v12 = vrot.slane %v452_v4, 9  ;;  %v1134_v13 = vrot.slane %v454_v0, 9  ;;  %v519_v14 = vmax.f32 %v394_v41, %v1119_v56  ;;  %v520_v8 = vmax.f32 %v402_v46, %v1120_v59 }
  0x46   : > { %v521_v15 = vmax.f32 %v401_v45, %v1121_v61  ;;  %v522_v16 = vmax.f32 %v403_v53, %v1122_v62  ;;  %v523_v17 = vmax.f32 %v411_v43, %v1123_v63  ;;  %v524_v18 = vmax.f32 %v419_v50, %v1124_v1 }
  0x47   : > { %v525_v19 = vmax.f32 %v418_v49, %v1125_v2  ;;  %v526_v20 = vmax.f32 %v420_v57, %v1126_v3  ;;  %v527_v21 = vmax.f32 %v428_v48, %v1127_v5  ;;  %v528_v22 = vmax.f32 %v436_v55, %v1128_v6 }
  0x48   : > { %v529_v23 = vmax.f32 %v435_v54, %v1129_v7  ;;  %v530_v24 = vmax.f32 %v437_v60, %v1130_v9  ;;  %v531_v25 = vmax.f32 %v445_v52, %v1131_v10  ;;  %v532_v26 = vmax.f32 %v453_v58, %v1132_v11 }
  0x49   : > { %v533_v27 = vmax.f32 %v452_v4, %v1133_v12  ;;  %v534_v33 = vmax.f32 %v454_v0, %v1134_v13  ;;  %v535_v37 = vmax.f32 %v519_v14, %v523_v17  ;;  %v536_v38 = vmax.f32 %v520_v8, %v524_v18 }
  0x4a   : > { %v537_v39 = vmax.f32 %v521_v15, %v525_v19  ;;  %v538_v40 = vmax.f32 %v522_v16, %v526_v20  ;;  %v539_v41 = vmax.f32 %v527_v21, %v531_v25  ;;  %v540_v42 = vmax.f32 %v528_v22, %v532_v26 }
  0x4b   : > { %v541_v43 = vmax.f32 %v529_v23, %v533_v27  ;;  %v542_v45 = vmax.f32 %v530_v24, %v534_v33  ;;  %v543_v46 = vmax.f32 %v535_v37, %v536_v38  ;;  %v597_v48 = vrot.slane %v519_v14, %v1437_v44 }
  0x4c   : > { %v544_v47 = vmax.f32 %v537_v39, %v538_v40  ;;  %v601_v49 = vrot.slane %v520_v8, %v1437_v44  ;;  %v545_v50 = vmax.f32 %v539_v41, %v540_v42  ;;  %v605_v52 = vrot.slane %v521_v15, %v1437_v44  ;;  %v678_v42 = vld [vmem:[%s1596_s2 + $0x28] sm:$0xff] }
  0x4d   : > { %v546_v51 = vmax.f32 %v541_v43, %v542_v45  ;;  %v609_v53 = vrot.slane %v522_v16, %v1437_v44  ;;  %v559_v54 = vrot.slane %v543_v46, %v1437_v44  ;;  %v613_v56 = vrot.slane %v523_v17, %v1437_v44  ;;  %v677_v43 = vld [vmem:[%s1596_s2 + $0x20] sm:$0xff] }
  0x4e   : > { %v563_v55 = vrot.slane %v544_v47, %v1437_v44  ;;  %v617_v57 = vrot.slane %v524_v18, %v1437_v44  ;;  %v547_v4 = vmax.f32 %v543_v46, %v545_v50  ;;  %v567_v59 = vrot.slane %v545_v50, %v1437_v44 }
  0x4f   : > { %v548_v58 = vmax.f32 %v544_v47, %v546_v51  ;;  %v571_v60 = vrot.slane %v546_v51, %v1437_v44  ;;  %v621_v62 = vrot.slane %v525_v19, %v1437_v44  ;;  %v625_v63 = vrot.slane %v526_v20, %v1437_v44  ;;  %v680_v51 = vld [vmem:[%s1596_s2 + $0x38] sm:$0xff] }
  0x50   : > { %v572_v61 = vsel %vm349_vm2, %v563_v55, %v559_v54  ;;  %v658_v0 = vsel %vm349_vm2, %v601_v49, %v597_v48  ;;  %v629_v5 = vrot.slane %v527_v21, %v1437_v44  ;;  %v633_v9 = vrot.slane %v528_v22, %v1437_v44 }
  0x51   : > { %v549_v1 = vmax.f32 %v547_v4, %v548_v58  ;;  %v573_v2 = vsel %vm351_vm3, %v567_v59, %v572_v61  ;;  %v659_v3 = vsel %vm351_vm3, %v605_v52, %v658_v0  ;;  %v637_v10 = vrot.slane %v529_v23, %v1437_v44  ;;  %v679_v52 = vld [vmem:[%s1596_s2 + $0x30] sm:$0xff]  ;;  %v682_v58 = vld [vmem:[%s1596_s2 + $0x48] sm:$0xff]  ;;  %v681_v59 = vld [vmem:[%s1596_s2 + $0x40] sm:$0xff] }
  0x52   : > { %v574_v6 = vsel %vm353_vm4, %v571_v60, %v573_v2  ;;  %v660_v7 = vsel %vm353_vm4, %v609_v53, %v659_v3  ;;  %v641_v14 = vrot.slane %v530_v24, %v1437_v44  ;;  %v645_v15 = vrot.slane %v531_v25, %v1437_v44  ;;  %v684_v2 = vld [vmem:[%s1596_s2 + $0x58] sm:$0xff]  ;;  %v683_v3 = vld [vmem:[%s1596_s2 + $0x50] sm:$0xff] }
  0x53   : > { %v551_v11 = vsel %vm550_vm9, %v549_v1, 0.0  ;;  %v577_v12 = vsel %vm576_vm10, %v574_v6, 0.0  ;;  %v661_v13 = vsel %vm355_vm5, %v613_v56, %v660_v7  ;;  %v649_v17 = vrot.slane %v532_v26, %v1437_v44 }
  0x54   : > { %1189 = vmatprep.mubr.msk.f32.mxu0 %vm233_vm0, %v551_v11  ;;  %v662_v8 = vsel %vm357_vm6, %v617_v57, %v661_v13  ;;  %v665_v18 = vsel %vm349_vm2, %v633_v9, %v629_v5  ;;  %v653_v20 = vrot.slane %v533_v27, %v1437_v44  ;;  %v657_v22 = vrot.slane %v534_v33, %v1437_v44  ;;  %v676_v27 = vld [vmem:[%s1596_s2 + $0x18] sm:$0xff]  ;;  %v675_v33 = vld [vmem:[%s1596_s2 + $0x10] sm:$0xff] }
  0x55   : > { %1190 = vmatmul.mubr.msk.f32.vlgmr.msra.gmra.mrb[0].mxu0 %vm233_vm0, %v577_v12  ;;  %v663_v16 = vsel %vm359_vm7, %v621_v62, %v662_v8  ;;  %v666_v21 = vsel %vm351_vm3, %v637_v10, %v665_v18 }
  0x56   : > { %v664_v19 = vsel %vm361_vm8, %v625_v63, %v663_v16  ;;  %v667_v23 = vsel %vm353_vm4, %v641_v14, %v666_v21 }
  0x57   : > { %1192 = vmatprep.mubr.msk.f32.mxu0 %vm233_vm0, %v664_v19  ;;  %v668_v24 = vsel %vm355_vm5, %v645_v15, %v667_v23 }
  0x58   : > { %v669_v25 = vsel %vm357_vm6, %v649_v17, %v668_v24 }
  0x59   : > { %v670_v26 = vsel %vm359_vm7, %v653_v20, %v669_v25 }
  0x5a   : > { %v671_v37 = vsel %vm361_vm8, %v657_v22, %v670_v26 }
  0x5b   : > { %1193 = vmatmul.mubr.msk.f32.gmra.mrb[2].mxu0 %vm233_vm0, %v671_v37 }
  0x5c   : > { %1195 = vmatprep.mubr.msk.f32.mxu0 %vm233_vm0, %v1410_v28  ;;  %v856_v28 = vld [vmem:[%s1597_s3] sm:$0xff] }
  0x5d   : > { %1207 = vmatprep.subr.mxu1 %v856_v28 }
  0x5e   : > { %1208 = vmatpush3.msra.mxu1 %v856_v28 }
  0x5f   : > { %1196 = vmatmul.mubr.msk.f32.gmra.mrb[4].mxu0 %vm233_vm0, %v1412_v29  ;;  %v674_v29 = vld [vmem:[%s1596_s2 + $0x8] sm:$0xff] }
  0x60   : > { %1198 = vmatprep.mubr.msk.f32.mxu0 %vm233_vm0, %v1414_v30  ;;  %v673_v30 = vld [vmem:[%s1596_s2] sm:$0xff] }
  0x63   : > { %1199 = vmatmul.mubr.msk.f32.gmra.mrb[6].mxu0 %vm233_vm0, %v1416_v31 }
  0x64   : > { %1201 = vmatprep.mubr.msk.f32.mxu0 %vm233_vm0, %v1418_v32 }
  0x67   : > { %1202 = vmatmul.mubr.msk.f32.gmra.mrb[8].mxu0 %vm233_vm0, %v1422_v34 }
  0x68   : > { %1204 = vmatprep.mubr.msk.f32.mxu0 %vm233_vm0, %v1424_v35 }
  0x6b   : > { %1205 = vmatmul.mubr.msk.f32.gmra.mrb[10].mxu0 %vm233_vm0, %v1426_v36 }
 0x128   : > { %v1191_v31 = vpop.f32.mrb[0].mxu0 }
 0x129   : > { %v791_v32 = vadd.f32 %v1191_v31, %v674_v29  ;;  %v785_v34 = vpop.f32.mrb[1].mxu0 }
 0x12a   : > { %v786_v35 = vadd.f32 %v785_v34, %v673_v30 }
 0x12b   : > { %v845_v36 = vmax.f32 %v791_v32, 0.0 }
 0x12c   : > { %v844_v44 = vmax.f32 %v786_v35, 0.0 }
 0x12e   : > { %1209 = vmatprep.mubr.msk.f32.mxu1 %vm233_vm0, %v844_v44  ;;  %v1194_v38 = vpop.f32.mrb[2].mxu0 }
 0x12f   : > { %1210 = vmatmul.mubr.msk.f32.vlgmr.msra.gmra.mrb[0].mxu1 %vm233_vm0, %v845_v36  ;;  %v801_v39 = vadd.f32 %v1194_v38, %v676_v27  ;;  %v795_v40 = vpop.f32.mrb[3].mxu0 }
 0x130   : > { %v796_v41 = vadd.f32 %v795_v40, %v675_v33 }
 0x131   : > { %v847_v47 = vmax.f32 %v801_v39, 0.0 }
 0x132   : > { %v846_v45 = vmax.f32 %v796_v41, 0.0  ;;  %v1197_v46 = vpop.f32.mrb[4].mxu0 }
 0x133   : > { %v811_v48 = vadd.f32 %v1197_v46, %v678_v42  ;;  %v805_v49 = vpop.f32.mrb[5].mxu0 }
 0x134   : > { %v806_v50 = vadd.f32 %v805_v49, %v677_v43  ;;  %1212 = vmatprep.mubr.msk.f32.mxu1 %vm233_vm0, %v846_v45 }
 0x135   : > { %1213 = vmatmul.mubr.msk.f32.gmra.mrb[2].mxu1 %vm233_vm0, %v847_v47  ;;  %v849_v55 = vmax.f32 %v811_v48, 0.0 }
 0x136   : > { %v848_v53 = vmax.f32 %v806_v50, 0.0  ;;  %v1200_v54 = vpop.f32.mrb[6].mxu0 }
 0x137   : > { %v821_v56 = vadd.f32 %v1200_v54, %v680_v51  ;;  %v815_v57 = vpop.f32.mrb[7].mxu0 }
 0x138   : > { %v816_v4 = vadd.f32 %v815_v57, %v679_v52  ;;  %1215 = vmatprep.mubr.msk.f32.mxu1 %vm233_vm0, %v848_v53 }
 0x139   : > { %1216 = vmatmul.mubr.msk.f32.gmra.mrb[4].mxu1 %vm233_vm0, %v849_v55  ;;  %v851_v62 = vmax.f32 %v821_v56, 0.0 }
 0x13a   : > { %v850_v60 = vmax.f32 %v816_v4, 0.0  ;;  %v1203_v61 = vpop.f32.mrb[8].mxu0 }
 0x13b   : > { %v831_v63 = vadd.f32 %v1203_v61, %v682_v58  ;;  %v825_v0 = vpop.f32.mrb[9].mxu0 }
 0x13c   : > { %v826_v1 = vadd.f32 %v825_v0, %v681_v59  ;;  %1218 = vmatprep.mubr.msk.f32.mxu1 %vm233_vm0, %v850_v60 }
 0x13d   : > { %1219 = vmatmul.mubr.msk.f32.gmra.mrb[6].mxu1 %vm233_vm0, %v851_v62  ;;  %v853_v7 = vmax.f32 %v831_v63, 0.0 }
 0x13e   : > { %v852_v5 = vmax.f32 %v826_v1, 0.0  ;;  %v1206_v6 = vpop.f32.mrb[10].mxu0 }
 0x13f   : > { %v841_v9 = vadd.f32 %v1206_v6, %v684_v2  ;;  %v835_v10 = vpop.f32.mrb[11].mxu0 }
 0x140   : > { %v836_v11 = vadd.f32 %v835_v10, %v683_v3  ;;  %1221 = vmatprep.mubr.msk.f32.mxu1 %vm233_vm0, %v852_v5 }
 0x141   : > { %1222 = vmatmul.mubr.msk.f32.gmra.mrb[8].mxu1 %vm233_vm0, %v853_v7  ;;  %v855_v13 = vmax.f32 %v841_v9, 0.0 }
 0x142   : > { %v854_v12 = vmax.f32 %v836_v11, 0.0 }
 0x144   : > { %1224 = vmatprep.mubr.msk.f32.mxu1 %vm233_vm0, %v854_v12 }
 0x145   : > { %1225 = vmatmul.mubr.msk.f32.gmra.mrb[10].mxu1 %vm233_vm0, %v855_v13 }
 0x202   : > { %v1211_v14 = vpop.f32.mrb[0].mxu1 }
 0x203   : > { %1019 = vst.msk [vmem:[%s1373_s29 + $0x8] sm:$0xff] %vm233_vm0, %v1211_v14  ;;  %v959_v8 = vpop.f32.mrb[1].mxu1 }
 0x204   : > { %1018 = vst.msk [vmem:[%s1373_s29] sm:$0xff] %vm233_vm0, %v959_v8 }
 0x208   : > { %v1214_v15 = vpop.f32.mrb[2].mxu1 }
 0x209   : > { %1021 = vst.msk [vmem:[%s1373_s29 + $0x18] sm:$0xff] %vm233_vm0, %v1214_v15  ;;  %v969_v16 = vpop.f32.mrb[3].mxu1 }
 0x20a   : > { %1020 = vst.msk [vmem:[%s1373_s29 + $0x10] sm:$0xff] %vm233_vm0, %v969_v16 }
 0x20c   : > { %v1217_v17 = vpop.f32.mrb[4].mxu1 }
 0x20d   : > { %1023 = vst.msk [vmem:[%s1373_s29 + $0x28] sm:$0xff] %vm233_vm0, %v1217_v17  ;;  %v979_v18 = vpop.f32.mrb[5].mxu1 }
 0x20e   : > { %1022 = vst.msk [vmem:[%s1373_s29 + $0x20] sm:$0xff] %vm233_vm0, %v979_v18 }
 0x210   : > { %v1220_v19 = vpop.f32.mrb[6].mxu1 }
 0x211   : > { %1025 = vst.msk [vmem:[%s1373_s29 + $0x38] sm:$0xff] %vm233_vm0, %v1220_v19  ;;  %v989_v20 = vpop.f32.mrb[7].mxu1 }
 0x212   : > { %1024 = vst.msk [vmem:[%s1373_s29 + $0x30] sm:$0xff] %vm233_vm0, %v989_v20 }
 0x214   : > { %v1223_v21 = vpop.f32.mrb[8].mxu1 }
 0x215   : > { %1027 = vst.msk [vmem:[%s1373_s29 + $0x48] sm:$0xff] %vm233_vm0, %v1223_v21  ;;  %v999_v22 = vpop.f32.mrb[9].mxu1 }
 0x216   : > { %1026 = vst.msk [vmem:[%s1373_s29 + $0x40] sm:$0xff] %vm233_vm0, %v999_v22 }
 0x218   : > { %v1226_v23 = vpop.f32.mrb[10].mxu1 }
 0x219   : > { %1029 = vst.msk [vmem:[%s1373_s29 + $0x58] sm:$0xff] %vm233_vm0, %v1226_v23  ;;  %v1009_v24 = vpop.f32.mrb[11].mxu1 }
 0x21a   : > { %1028 = vst.msk [vmem:[%s1373_s29 + $0x50] sm:$0xff] %vm233_vm0, %v1009_v24 }
 0x21b PF: > { %s14_s19 = sadd.s32 1, %s1307_s19   ;;  %s1599_s15 = smov %s1299_s17 }
 0x21c   : > { %p11_p8 = scmp.ge.s32.totalorder %s14_s19, 18   ;;  %s1600_s16 = smov %s1303_s18 }
 0x21d   : > { %s1601_s17 = smov %s1604_s20  ;;  %s1602_s18 = smov %s1608_s21 }
 0x21e   :  { %13 = sbr.rel (!%p11_p8) target bundleno = 3 (0x3), region = 71 }

</bundles_post_ra>
